<compile_context>
chip_gen: v7x
topology: tpu7x:2x2x1
jax: 0.10.0
libtpu: 0.0.40
codegen_flags: <defaults>
</compile_context>

<pallas_src>
import math

import jax
import jax.numpy as jnp
from jax.experimental import pallas as pl
from jax.experimental.pallas import tpu as pltpu


def _round_up(x, m):
    return (x + m - 1) // m * m


# -----------------------------------------------------------------------------
# Kernels
# -----------------------------------------------------------------------------
def forward_kernel(oc_ref, aux_ref, w1o_ref, w1a_ref, b1_ref, wh_ref, bh_ref,
                   act_ref, pred_ref):
    """Fused MLP: hidden + (action ++ prediction) heads for one batch tile."""
    h = (jnp.dot(oc_ref[...], w1o_ref[...], preferred_element_type=jnp.float32)
         + jnp.dot(aux_ref[...], w1a_ref[...], preferred_element_type=jnp.float32)
         + b1_ref[...])
    h = jnp.maximum(h, 0.0).astype(wh_ref.dtype)                    # ReLU, bf16
    y = jnp.dot(h, wh_ref[...], preferred_element_type=jnp.float32) + bh_ref[...]
    n_act = act_ref.shape[1]
    act_ref[...] = y[:, :n_act]                                     # [TB, 256]
    pred_ref[...] = y[:, n_act:]                                    # [TB, E]


def train_kernel(nv_ref, lw_ref, oc_ref, on_ref, aux_ref, lab_ref,
                 w1o_ref, w1a_ref, b1_ref, wh_ref, bh_ref,
                 act_ref, pred_ref, ce_ref, mse_ref):
    """Single-call train step: forward(obs) + forward(next_obs) + CE + MSE."""
    i = pl.program_id(0)
    tb = oc_ref.shape[0]
    n_act = act_ref.shape[1]
    e = pred_ref.shape[1]

    @pl.when(i == 0)
    def _():
        ce_ref[...] = jnp.zeros_like(ce_ref)
        mse_ref[...] = jnp.zeros_like(mse_ref)

    # Shared text/state contribution (identical for obs and next_obs passes).
    a = (jnp.dot(aux_ref[...], w1a_ref[...], preferred_element_type=jnp.float32)
         + b1_ref[...])                                             # [TB, H]

    # Stack both passes along the row axis -> one 2*TB-row MXU pass,
    # w1_obs / w_heads are consumed once per tile instead of twice.
    x2 = jnp.concatenate([oc_ref[...], on_ref[...]], axis=0)        # [2TB, Cop] bf16
    h2 = (jnp.dot(x2, w1o_ref[...], preferred_element_type=jnp.float32)
          + jnp.concatenate([a, a], axis=0))
    h2 = jnp.maximum(h2, 0.0).astype(wh_ref.dtype)                  # ReLU, bf16

    # Fused action + prediction heads: one [H, 384] matmul.
    y = jnp.dot(h2, wh_ref[...], preferred_element_type=jnp.float32) + bh_ref[...]

    logits = y[:tb, :n_act]                                         # obs logits [TB,256]
    pred_c = y[:tb, n_act:]                                         # obs prediction [TB,E]
    pred_n = y[tb:, n_act:]                                         # next_obs token [TB,E]

    act_ref[...] = logits
    pred_ref[...] = pred_c

    # ---------------- fused loss (VPU/EUP work hidden under MXU) -------------
    nvalid = nv_ref[0]                                              # actual batch size
    row = jax.lax.broadcasted_iota(jnp.int32, (tb, 1), 0) + i * tb
    valid = (row < nvalid).astype(jnp.float32)                      # mask padded rows

    # Stable log-softmax cross-entropy over 256 classes.
    m = jnp.max(logits, axis=-1, keepdims=True)
    lse = jnp.log(jnp.sum(jnp.exp(logits - m), axis=-1, keepdims=True)) + m
    cls = jax.lax.broadcasted_iota(jnp.int32, logits.shape, 1)
    onehot = (cls == lab_ref[...]).astype(jnp.float32)
    picked = jnp.sum(logits * onehot, axis=-1, keepdims=True)
    ce_ref[...] += jnp.sum((lse - picked) * valid, axis=(0, 1), keepdims=True)

    # MSE between predicted next-token embedding and the next_obs embedding.
    diff = (pred_c - pred_n) * valid
    mse_ref[...] += jnp.sum(diff * diff, axis=(0, 1), keepdims=True)

    # Finalize with GLOBAL normalization and the SMEM loss weights.
    @pl.when(i == pl.num_programs(0) - 1)
    def _():
        nf = nvalid.astype(jnp.float32)
        ce_ref[...] = ce_ref[...] * (lw_ref[0] / nf)
        mse_ref[...] = mse_ref[...] * (lw_ref[1] / (nf * e))


# -----------------------------------------------------------------------------
# Wrapper-side layout prep (bf16 casts, lane/sublane padding, w1 row split)
# -----------------------------------------------------------------------------
def _prep_features(obs, texts, states, bp):
    b = obs.shape[0]
    obs_flat = obs.reshape(b, -1).astype(jnp.bfloat16)              # [B, Co]
    co = obs_flat.shape[1]
    cop = _round_up(co, 128)
    aux = jnp.concatenate([jnp.mean(texts, axis=1), states],
                          axis=-1).astype(jnp.bfloat16)             # [B, Dt+Ds]
    auxp = _round_up(aux.shape[1], 128)
    obs_p = jnp.pad(obs_flat, ((0, bp - b), (0, cop - co)))
    aux_p = jnp.pad(aux, ((0, bp - b), (0, auxp - aux.shape[1])))
    return obs_p, aux_p


def _prep_params(params, co):
    w1, b1 = params["w1"], params["b1"]
    wa, ba = params["wa"], params["ba"]
    wp, bp_ = params["wp"], params["bp"]
    aux_in = w1.shape[0] - co
    cop = _round_up(co, 128)
    auxp = _round_up(aux_in, 128)
    w1o = jnp.pad(w1[:co], ((0, cop - co), (0, 0))).astype(jnp.bfloat16)
    w1a = jnp.pad(w1[co:], ((0, auxp - aux_in), (0, 0))).astype(jnp.bfloat16)
    wh = jnp.concatenate([wa, wp], axis=1).astype(jnp.bfloat16)     # [H, 256+E]
    bh = jnp.concatenate([ba, bp_], axis=1).astype(jnp.float32)     # [1, 256+E]
    return w1o, w1a, b1.astype(jnp.float32), wh, bh


def _tiling(b):
    tb = 256 if b > 256 else _round_up(b, 16)   # bf16 sublane pack = 16 rows
    bp = _round_up(b, tb)
    return tb, bp, bp // tb


# -----------------------------------------------------------------------------
# Public API: Agent.forward and Agent.compute_loss equivalents
# -----------------------------------------------------------------------------
@jax.jit
def agent_forward(obs, texts, states, params):
    """Agent.forward(obs, texts, states) -> (actions, prediction)."""
    b = obs.shape[0]
    co = math.prod(obs.shape[1:])
    tb, bp, nb = _tiling(b)

    obs_p, aux_p = _prep_features(obs, texts, states, bp)
    w1o, w1a, b1, wh, bh = _prep_params(params, co)
    cop, hd = w1o.shape
    auxp = w1a.shape[0]
    ae = wh.shape[1]
    n_act = params["wa"].shape[1]
    e = params["wp"].shape[1]

    acts, preds = pl.pallas_call(
        forward_kernel,
        out_shape=(jax.ShapeDtypeStruct((bp, n_act), jnp.float32),
                   jax.ShapeDtypeStruct((bp, e), jnp.float32)),
        grid=(nb,),
        in_specs=[
            pl.BlockSpec((tb, cop), lambda i: (i, 0)),
            pl.BlockSpec((tb, auxp), lambda i: (i, 0)),
            pl.BlockSpec((cop, hd), lambda i: (0, 0)),   # weights resident
            pl.BlockSpec((auxp, hd), lambda i: (0, 0)),
            pl.BlockSpec((1, hd), lambda i: (0, 0)),
            pl.BlockSpec((hd, ae), lambda i: (0, 0)),
            pl.BlockSpec((1, ae), lambda i: (0, 0)),
        ],
        out_specs=(pl.BlockSpec((tb, n_act), lambda i: (i, 0)),
                   pl.BlockSpec((tb, e), lambda i: (i, 0))),
        compiler_params=pltpu.CompilerParams(
            dimension_semantics=("parallel",)),
    )(obs_p, aux_p, w1o, w1a, b1, wh, bh)
    return acts[:b], preds[:b]


@jax.jit
def agent_compute_loss(obs, next_obs, texts, states, actions, params, loss_weight):
    """Agent.compute_loss hot path, fully fused in one pallas_call.

    Returns (predict_actions, prediction, loss_actions, loss_observation).
    """
    b = obs.shape[0]
    co = math.prod(obs.shape[1:])
    tb, bp, nb = _tiling(b)

    obs_p, aux_p = _prep_features(obs, texts, states, bp)
    nxt_p, _ = _prep_features(next_obs, texts, states, bp)   # same texts/states
    w1o, w1a, b1, wh, bh = _prep_params(params, co)
    cop, hd = w1o.shape
    auxp = w1a.shape[0]
    ae = wh.shape[1]
    n_act = params["wa"].shape[1]
    e = params["wp"].shape[1]

    labels = jnp.pad(actions.reshape(-1).astype(jnp.int32),
                     (0, bp - b)).reshape(bp, 1)
    nvalid = jnp.array([b], jnp.int32)                       # SMEM scalar
    lw = jnp.asarray(loss_weight, jnp.float32).reshape(2)    # SMEM scalars

    smem = pl.BlockSpec(memory_space=pltpu.MemorySpace.SMEM)
    acts, preds, ce, mse = pl.pallas_call(
        train_kernel,
        out_shape=(jax.ShapeDtypeStruct((bp, n_act), jnp.float32),
                   jax.ShapeDtypeStruct((bp, e), jnp.float32),
                   jax.ShapeDtypeStruct((1, 1), jnp.float32),
                   jax.ShapeDtypeStruct((1, 1), jnp.float32)),
        grid=(nb,),
        in_specs=[
            smem,                                            # nvalid
            smem,                                            # loss_weight
            pl.BlockSpec((tb, cop), lambda i: (i, 0)),       # obs tile
            pl.BlockSpec((tb, cop), lambda i: (i, 0)),       # next_obs tile
            pl.BlockSpec((tb, auxp), lambda i: (i, 0)),      # text/state aux tile
            pl.BlockSpec((tb, 1), lambda i: (i, 0)),         # action labels
            pl.BlockSpec((cop, hd), lambda i: (0, 0)),       # weights resident
            pl.BlockSpec((auxp, hd), lambda i: (0, 0)),
            pl.BlockSpec((1, hd), lambda i: (0, 0)),
            pl.BlockSpec((hd, ae), lambda i: (0, 0)),
            pl.BlockSpec((1, ae), lambda i: (0, 0)),
        ],
        out_specs=(pl.BlockSpec((tb, n_act), lambda i: (i, 0)),
                   pl.BlockSpec((tb, e), lambda i: (i, 0)),
                   pl.BlockSpec((1, 1), lambda i: (0, 0)),   # CE accumulator
                   pl.BlockSpec((1, 1), lambda i: (0, 0))),  # MSE accumulator
        compiler_params=pltpu.CompilerParams(
            # loss accumulates across batch tiles -> keep the axis sequential
            dimension_semantics=("arbitrary",)),
    )(nvalid, lw, obs_p, nxt_p, aux_p, labels, w1o, w1a, b1, wh, bh)
    return acts[:b], preds[:b], ce[0, 0], mse[0, 0]


# -----------------------------------------------------------------------------
# Deterministic parameter construction (synthetic model)
# -----------------------------------------------------------------------------
def init_params(key, feat_dim, hidden=128, n_actions=256, embed=128):
    ks = jax.random.split(key, 6)
    s = 0.02
    return {
        "w1": s * jax.random.normal(ks[0], (feat_dim, hidden), jnp.float32),
        "b1": jnp.zeros((1, hidden), jnp.float32),
        "wa": s * jax.random.normal(ks[1], (hidden, n_actions), jnp.float32),
        "ba": jnp.zeros((1, n_actions), jnp.float32),
        "wp": s * jax.random.normal(ks[2], (hidden, embed), jnp.float32),
        "bp": jnp.zeros((1, embed), jnp.float32),
    }


if __name__ == "__main__":
    key = jax.random.PRNGKey(0)
    k_obs, k_nobs, k_txt, k_st, k_act, k_par = jax.random.split(key, 6)

    # Small shapes implied by the forward: image obs (NCHW), text tokens, states.
    B, C, H, W = 2, 4, 16, 16
    T, Dt = 8, 32
    Ds = 8
    HID, N_ACT, EMB = 128, 256, 128

    obs = jax.random.normal(k_obs, (B, C, H, W), jnp.float32)
    next_obs = jax.random.normal(k_nobs, (B, C, H, W), jnp.float32)
    texts = jax.random.normal(k_txt, (B, T, Dt), jnp.float32)     # text embeddings
    states = jax.random.normal(k_st, (B, Ds), jnp.float32)
    actions = jax.random.randint(k_act, (B,), 0, N_ACT, jnp.int32)

    feat_dim = C * H * W + Dt + Ds
    params = init_params(k_par, feat_dim, HID, N_ACT, EMB)
    loss_weight = jnp.array([1.0, 0.5], jnp.float32)  # cfg['training']['agent']['loss_weight']

    # forward: (actions, prediction) = model(obs, texts, states)
    predict_actions, prediction = agent_forward(obs, texts, states, params)

    # compute_loss hot path: obs pass + next_obs pass + CE + MSE, one kernel.
    pa, pred, loss_actions, loss_observation = agent_compute_loss(
        obs, next_obs, texts, states, actions, params, loss_weight)

    jax.block_until_ready((predict_actions, prediction, pa, pred,
                           loss_actions, loss_observation))
    print("KERNEL_OK")
</pallas_src>

<mosaic_0001>
module attributes {stable_mosaic.version = 11 : i64} {
  func.func @forward_kernel(%arg0: i32, %arg1: memref<16x1024xbf16, #tpu.memory_space<vmem>>, %arg2: memref<16x128xbf16, #tpu.memory_space<vmem>>, %arg3: memref<1024x128xbf16, #tpu.memory_space<vmem>>, %arg4: memref<128x128xbf16, #tpu.memory_space<vmem>>, %arg5: memref<1x128xf32, #tpu.memory_space<vmem>>, %arg6: memref<128x384xbf16, #tpu.memory_space<vmem>>, %arg7: memref<1x384xf32, #tpu.memory_space<vmem>>, %arg8: memref<16x256xf32, #tpu.memory_space<vmem>>, %arg9: memref<16x128xf32, #tpu.memory_space<vmem>>) attributes {dimension_semantics = [#tpu.dimension_semantics<parallel>], iteration_bounds = array<i64: 1>, scalar_prefetch = 0 : i64, scratch_operands = 0 : i64, tpu.core_type = #tpu.core_type<tc>, window_params = [{transform_indices = @transform_0, window_bounds = array<i64: 16, 1024>}, {transform_indices = @transform_1, window_bounds = array<i64: 16, 128>}, {pipeline_mode = #tpu.pipeline_mode<synchronous>, transform_indices = @transform_2, window_bounds = array<i64: 1024, 128>}, {pipeline_mode = #tpu.pipeline_mode<synchronous>, transform_indices = @transform_3, window_bounds = array<i64: 128, 128>}, {pipeline_mode = #tpu.pipeline_mode<synchronous>, transform_indices = @transform_4, window_bounds = array<i64: 1, 128>}, {pipeline_mode = #tpu.pipeline_mode<synchronous>, transform_indices = @transform_5, window_bounds = array<i64: 128, 384>}, {pipeline_mode = #tpu.pipeline_mode<synchronous>, transform_indices = @transform_6, window_bounds = array<i64: 1, 384>}, {transform_indices = @transform_7, window_bounds = array<i64: 16, 256>}, {transform_indices = @transform_8, window_bounds = array<i64: 16, 128>}]} {
    %c0 = arith.constant 0 : index
    %c0_0 = arith.constant 0 : index
    %0 = vector.load %arg1[%c0, %c0_0] : memref<16x1024xbf16, #tpu.memory_space<vmem>>, vector<16x1024xbf16>
    %c0_1 = arith.constant 0 : index
    %c0_2 = arith.constant 0 : index
    %1 = vector.load %arg3[%c0_1, %c0_2] : memref<1024x128xbf16, #tpu.memory_space<vmem>>, vector<1024x128xbf16>
    %cst = arith.constant dense<0.000000e+00> : vector<16x128xf32>
    %2 = tpu.matmul %0, %1, %cst {dimension_numbers = #tpu.dot_dimension_numbers<[1], [0], [0], [1], [0, 0, 1, 1], [], []>} : vector<16x1024xbf16>, vector<1024x128xbf16>, vector<16x128xf32> -> vector<16x128xf32>
    %c0_3 = arith.constant 0 : index
    %c0_4 = arith.constant 0 : index
    %3 = vector.load %arg2[%c0_3, %c0_4] : memref<16x128xbf16, #tpu.memory_space<vmem>>, vector<16x128xbf16>
    %c0_5 = arith.constant 0 : index
    %c0_6 = arith.constant 0 : index
    %4 = vector.load %arg4[%c0_5, %c0_6] : memref<128x128xbf16, #tpu.memory_space<vmem>>, vector<128x128xbf16>
    %cst_7 = arith.constant dense<0.000000e+00> : vector<16x128xf32>
    %5 = tpu.matmul %3, %4, %cst_7 {dimension_numbers = #tpu.dot_dimension_numbers<[1], [0], [0], [1], [0, 0, 1, 1], [], []>} : vector<16x128xbf16>, vector<128x128xbf16>, vector<16x128xf32> -> vector<16x128xf32>
    %6 = arith.addf %2, %5 : vector<16x128xf32>
    %c0_8 = arith.constant 0 : index
    %c0_9 = arith.constant 0 : index
    %7 = vector.load %arg5[%c0_8, %c0_9] : memref<1x128xf32, #tpu.memory_space<vmem>>, vector<1x128xf32>
    %8 = vector.broadcast %7 : vector<1x128xf32> to vector<16x128xf32>
    %9 = arith.addf %6, %8 : vector<16x128xf32>
    %cst_10 = arith.constant 0.000000e+00 : f32
    %10 = vector.broadcast %cst_10 : f32 to vector<16x128xf32>
    %11 = arith.maximumf %9, %10 : vector<16x128xf32>
    %12 = arith.truncf %11 : vector<16x128xf32> to vector<16x128xbf16>
    %c0_11 = arith.constant 0 : index
    %c0_12 = arith.constant 0 : index
    %13 = vector.load %arg6[%c0_11, %c0_12] : memref<128x384xbf16, #tpu.memory_space<vmem>>, vector<128x384xbf16>
    %cst_13 = arith.constant dense<0.000000e+00> : vector<16x384xf32>
    %14 = tpu.matmul %12, %13, %cst_13 {dimension_numbers = #tpu.dot_dimension_numbers<[1], [0], [0], [1], [0, 0, 1, 1], [], []>} : vector<16x128xbf16>, vector<128x384xbf16>, vector<16x384xf32> -> vector<16x384xf32>
    %c0_14 = arith.constant 0 : index
    %c0_15 = arith.constant 0 : index
    %15 = vector.load %arg7[%c0_14, %c0_15] : memref<1x384xf32, #tpu.memory_space<vmem>>, vector<1x384xf32>
    %16 = vector.broadcast %15 : vector<1x384xf32> to vector<16x384xf32>
    %17 = arith.addf %14, %16 : vector<16x384xf32>
    %18 = vector.extract_strided_slice %17 {offsets = [0, 0], sizes = [16, 256], strides = [1, 1]} : vector<16x384xf32> to vector<16x256xf32>
    %c0_16 = arith.constant 0 : index
    %c0_17 = arith.constant 0 : index
    %19 = vector.load %arg8[%c0_16, %c0_17] : memref<16x256xf32, #tpu.memory_space<vmem>>, vector<16x256xf32>
    tpu.vector_store %arg8[%c0_16, %c0_17], %18 {strides = array<i32>} : memref<16x256xf32, #tpu.memory_space<vmem>>, vector<16x256xf32>,
    %20 = vector.extract_strided_slice %17 {offsets = [0, 256], sizes = [16, 128], strides = [1, 1]} : vector<16x384xf32> to vector<16x128xf32>
    %c0_18 = arith.constant 0 : index
    %c0_19 = arith.constant 0 : index
    %21 = vector.load %arg9[%c0_18, %c0_19] : memref<16x128xf32, #tpu.memory_space<vmem>>, vector<16x128xf32>
    tpu.vector_store %arg9[%c0_18, %c0_19], %20 {strides = array<i32>} : memref<16x128xf32, #tpu.memory_space<vmem>>, vector<16x128xf32>,
    return
  }
  func.func @transform_0(%arg0: i32) -> (i32, i32) {
    %c0_i32 = arith.constant 0 : i32
    %c0_i32_0 = arith.constant 0 : i32
    return %arg0, %c0_i32 : i32, i32
  }
  func.func @transform_1(%arg0: i32) -> (i32, i32) {
    %c0_i32 = arith.constant 0 : i32
    %c0_i32_0 = arith.constant 0 : i32
    return %arg0, %c0_i32 : i32, i32
  }
  func.func @transform_2(%arg0: i32) -> (i32, i32) {
    %c0_i32 = arith.constant 0 : i32
    %c0_i32_0 = arith.constant 0 : i32
    %c0_i32_1 = arith.constant 0 : i32
    return %c0_i32, %c0_i32_0 : i32, i32
  }
  func.func @transform_3(%arg0: i32) -> (i32, i32) {
    %c0_i32 = arith.constant 0 : i32
    %c0_i32_0 = arith.constant 0 : i32
    %c0_i32_1 = arith.constant 0 : i32
    return %c0_i32, %c0_i32_0 : i32, i32
  }
  func.func @transform_4(%arg0: i32) -> (i32, i32) {
    %c0_i32 = arith.constant 0 : i32
    %c0_i32_0 = arith.constant 0 : i32
    %c0_i32_1 = arith.constant 0 : i32
    return %c0_i32, %c0_i32_0 : i32, i32
  }
  func.func @transform_5(%arg0: i32) -> (i32, i32) {
    %c0_i32 = arith.constant 0 : i32
    %c0_i32_0 = arith.constant 0 : i32
    %c0_i32_1 = arith.constant 0 : i32
    return %c0_i32, %c0_i32_0 : i32, i32
  }
  func.func @transform_6(%arg0: i32) -> (i32, i32) {
    %c0_i32 = arith.constant 0 : i32
    %c0_i32_0 = arith.constant 0 : i32
    %c0_i32_1 = arith.constant 0 : i32
    return %c0_i32, %c0_i32_0 : i32, i32
  }
  func.func @transform_7(%arg0: i32) -> (i32, i32) {
    %c0_i32 = arith.constant 0 : i32
    %c0_i32_0 = arith.constant 0 : i32
    return %arg0, %c0_i32 : i32, i32
  }
  func.func @transform_8(%arg0: i32) -> (i32, i32) {
    %c0_i32 = arith.constant 0 : i32
    %c0_i32_0 = arith.constant 0 : i32
    return %arg0, %c0_i32 : i32, i32
  }
}

</mosaic_0001>

<bundles_post_ra>
// kernel: agent_forward.1
= control target key start
LH: loop header
LB: loop body
LE: loop exit
PB: predicated region body
PF: predicated region fallthrough
CT: control target
= control target key end

     0   :  { %v1513_v0 = vmov 0.0   ;;  %vm1514_vm0 = vmmov 0   ;;  %s1920_s3 = inlined_call_operand.vmem [shape: bf16[128,128], index: 3, kind: input, shape index: {}]   ;;  %s1921_s2 = inlined_call_operand.vmem [shape: bf16[1024,128], index: 2, kind: input, shape index: {}]   ;;  %s1922_s0 = inlined_call_operand.vmem [shape: bf16[16,1024], index: 0, kind: input, shape index: {}]   ;;  %s1923_s1 = inlined_call_operand.vmem [shape: bf16[16,128], index: 1, kind: input, shape index: {}]   ;;  %s1924_s5 = inlined_call_operand.vmem [shape: bf16[128,384], index: 5, kind: input, shape index: {}]   ;;  %s1925_s4 = inlined_call_operand.vmem [shape: f32[1,128], index: 4, kind: input, shape index: {}]   ;;  %s1926_s6 = inlined_call_operand.vmem [shape: f32[1,384], index: 6, kind: input, shape index: {}]   ;;  %s1927_s7 = inlined_call_operand.vmem [shape: f32[16,256], index: 7, kind: output, shape index: {0}]   ;;  %s1928_s8 = inlined_call_operand.vmem [shape: f32[16,128], index: 8, kind: output, shape index: {1}]  }
   0x1   :  { %1365 = vmatprep.subr.bf16.mxu0 %v1513_v0  ;;  %v1408_v1 = vld [vmem:[%s1920_s3] sm:$0xff]   ;;  %1381 = vmatprep.mubr.msk.bf16.mxu0 %vm1514_vm0, %v1513_v0  ;;  %v1411_v4 = vld [vmem:[%s1920_s3 + $0x8] sm:$0xff]   ;;  %v1414_v7 = vld [vmem:[%s1920_s3 + $0x10] sm:$0xff]  }
   0x2   :  { %v1409_v2 = vld [vmem:[%s1921_s2 + $0x40] sm:$0xff]   ;;  %1366 = vmatpush3.bf16.msra.mxu0 %v1408_v1  ;;  %v1412_v5 = vld [vmem:[%s1921_s2 + $0x48] sm:$0xff]   ;;  %v1415_v8 = vld [vmem:[%s1921_s2 + $0x50] sm:$0xff]  }
   0x3   :  { %v1410_v3 = vld [vmem:[%s1921_s2] sm:$0xff]   ;;  %1268 = vmatprep.subr.bf16.mxu1 %v1409_v2  ;;  %1367 = vmatprep.subr.bf16.mxu0 %v1513_v0  ;;  %v1413_v6 = vld [vmem:[%s1921_s2 + $0x8] sm:$0xff]   ;;  %v1416_v9 = vld [vmem:[%s1921_s2 + $0x10] sm:$0xff]  }
   0x4   :  { %1269 = vmatpush3.bf16.msra.mxu1 %v1410_v3  ;;  %v1417_v10 = vld [vmem:[%s1920_s3 + $0x18] sm:$0xff]   ;;  %v1421_v13 = vld [vmem:[%s1921_s2 + $0x60] sm:$0xff]   ;;  %v1424_v16 = vld [vmem:[%s1921_s2 + $0x68] sm:$0xff]  }
   0x5   :  { %1270 = vmatprep.subr.bf16.mxu1 %v1412_v5  ;;  %v1418_v11 = vld [vmem:[%s1921_s2 + $0x58] sm:$0xff]   ;;  %v1420_v14 = vld [vmem:[%s1920_s3 + $0x20] sm:$0xff]   ;;  %v1423_v17 = vld [vmem:[%s1920_s3 + $0x28] sm:$0xff]  }
   0x6   :  { %1368 = vmatpush3.bf16.msra.mxu0 %v1411_v4  ;;  %v1419_v12 = vld [vmem:[%s1921_s2 + $0x18] sm:$0xff]   ;;  %v1422_v15 = vld [vmem:[%s1921_s2 + $0x20] sm:$0xff]   ;;  %v1425_v18 = vld [vmem:[%s1921_s2 + $0x28] sm:$0xff]  }
   0x7   :  { %1369 = vmatprep.subr.bf16.mxu0 %v1513_v0  ;;  %v1427_v19 = vld [vmem:[%s1921_s2 + $0x70] sm:$0xff]   ;;  %v1429_v22 = vld [vmem:[%s1920_s3 + $0x38] sm:$0xff]   ;;  %v29_v24 = vld [vmem:[%s1922_s0] sm:$0xff] }
   0x8   :  { %1271 = vmatpush3.bf16.msra.mxu1 %v1413_v6  ;;  %v1426_v20 = vld [vmem:[%s1920_s3 + $0x30] sm:$0xff]   ;;  %v1430_v23 = vld [vmem:[%s1921_s2 + $0x78] sm:$0xff]   ;;  %v33_v25 = vld [vmem:[%s1922_s0 + $0x20] sm:$0xff] }
   0x9   :  { %1272 = vmatprep.subr.bf16.mxu1 %v1415_v8  ;;  %v1428_v21 = vld [vmem:[%s1921_s2 + $0x30] sm:$0xff]   ;;  %v1431_v26 = vld [vmem:[%s1921_s2 + $0x38] sm:$0xff]   ;;  %v1163_v27 = vcombine.high %v29_v24, %v33_v25  ;;  %v1432_v28 = vld [vmem:[%s1923_s1] sm:$0xff]   ;;  %v1162_v33 = vcombine.low %v29_v24, %v33_v25 }
   0xa   :  { %1370 = vmatpush3.bf16.msra.mxu0 %v1414_v7  ;;  %v1433_v29 = vld [vmem:[%s1921_s2 + $0xc0] sm:$0xff]   ;;  %v1437_v34 = vld [vmem:[%s1921_s2 + $0xc8] sm:$0xff]   ;;  %v1441_v38 = vld [vmem:[%s1921_s2 + $0xd0] sm:$0xff]  }
   0xb   :  { %1371 = vmatprep.subr.bf16.mxu0 %v1513_v0  ;;  %734 = vmatprep.mubr.bf16.mxu1 %v1163_v27  ;;  %v1434_v30 = vld [vmem:[%s1921_s2 + $0x80] sm:$0xff]   ;;  %v1438_v35 = vld [vmem:[%s1921_s2 + $0x88] sm:$0xff]   ;;  %v1442_v39 = vld [vmem:[%s1921_s2 + $0x90] sm:$0xff]  }
   0xc   :  { %1273 = vmatpush3.bf16.msra.mxu1 %v1416_v9  ;;  %v1435_v31 = vld [vmem:[%s1921_s2 + $0x140] sm:$0xff]   ;;  %v1439_v36 = vld [vmem:[%s1921_s2 + $0x148] sm:$0xff]   ;;  %v1443_v40 = vld [vmem:[%s1921_s2 + $0x150] sm:$0xff]  }
   0xd   :  { %1274 = vmatprep.subr.bf16.mxu1 %v1418_v11  ;;  %v1436_v32 = vld [vmem:[%s1921_s2 + $0x100] sm:$0xff]   ;;  %v1440_v37 = vld [vmem:[%s1921_s2 + $0x108] sm:$0xff]   ;;  %v1444_v41 = vld [vmem:[%s1921_s2 + $0x110] sm:$0xff]  }
   0xe   :  { %1372 = vmatpush3.bf16.msra.mxu0 %v1417_v10  ;;  %v1445_v42 = vld [vmem:[%s1921_s2 + $0xd8] sm:$0xff]   ;;  %v1449_v46 = vld [vmem:[%s1921_s2 + $0xe0] sm:$0xff]   ;;  %v1453_v50 = vld [vmem:[%s1921_s2 + $0xe8] sm:$0xff]  }
   0xf   :  { %1373 = vmatprep.subr.bf16.mxu0 %v1513_v0  ;;  %v1446_v43 = vld [vmem:[%s1921_s2 + $0x98] sm:$0xff]   ;;  %v1450_v47 = vld [vmem:[%s1921_s2 + $0xa0] sm:$0xff]   ;;  %v1454_v51 = vld [vmem:[%s1921_s2 + $0xa8] sm:$0xff]  }
  0x10   :  { %1275 = vmatpush3.bf16.msra.mxu1 %v1419_v12  ;;  %v1447_v44 = vld [vmem:[%s1921_s2 + $0x158] sm:$0xff]   ;;  %v1451_v48 = vld [vmem:[%s1921_s2 + $0x160] sm:$0xff]   ;;  %v1455_v52 = vld [vmem:[%s1921_s2 + $0x168] sm:$0xff]  }
  0x11   :  { %1276 = vmatprep.subr.bf16.mxu1 %v1421_v13  ;;  %v1448_v45 = vld [vmem:[%s1921_s2 + $0x118] sm:$0xff]   ;;  %v1452_v49 = vld [vmem:[%s1921_s2 + $0x120] sm:$0xff]   ;;  %v1456_v53 = vld [vmem:[%s1921_s2 + $0x128] sm:$0xff]  }
  0x12   :  { %1374 = vmatpush3.bf16.msra.mxu0 %v1420_v14  ;;  %v1457_v54 = vld [vmem:[%s1921_s2 + $0xf0] sm:$0xff]   ;;  %v1461_v58 = vld [vmem:[%s1921_s2 + $0xf8] sm:$0xff]   ;;  %v30_v60 = vld [vmem:[%s1922_s0 + $0x8] sm:$0xff] }
  0x13   :  { %1375 = vmatprep.subr.bf16.mxu0 %v1513_v0  ;;  %v1458_v55 = vld [vmem:[%s1921_s2 + $0xb0] sm:$0xff]   ;;  %v1463_v59 = vld [vmem:[%s1921_s2 + $0x178] sm:$0xff]   ;;  %v34_v61 = vld [vmem:[%s1922_s0 + $0x28] sm:$0xff] }
  0x14   :  { %1277 = vmatpush3.bf16.msra.mxu1 %v1422_v15  ;;  %v1459_v56 = vld [vmem:[%s1921_s2 + $0x170] sm:$0xff]   ;;  %v1462_v62 = vld [vmem:[%s1921_s2 + $0xb8] sm:$0xff]   ;;  %v1165_v63 = vcombine.high %v30_v60, %v34_v61  ;;  %v1465_v1 = vld [vmem:[%s1921_s2 + $0x1c0] sm:$0xff]   ;;  %v1164_v6 = vcombine.low %v30_v60, %v34_v61 }
  0x15   :  { %1278 = vmatprep.subr.bf16.mxu1 %v1424_v16  ;;  %v1460_v57 = vld [vmem:[%s1921_s2 + $0x130] sm:$0xff]   ;;  %v1464_v4 = vld [vmem:[%s1921_s2 + $0x138] sm:$0xff]   ;;  %v1466_v7 = vld [vmem:[%s1921_s2 + $0x180] sm:$0xff]  }
  0x16   :  { %1376 = vmatpush3.bf16.msra.mxu0 %v1423_v17  ;;  %v31_v2 = vld [vmem:[%s1922_s0 + $0x10] sm:$0xff]  ;;  %v1467_v9 = vld [vmem:[%s1921_s2 + $0x1c8] sm:$0xff]   ;;  %v1471_v13 = vld [vmem:[%s1921_s2 + $0x1d8] sm:$0xff]  }
  0x17   :  { %1377 = vmatprep.subr.bf16.mxu0 %v1513_v0  ;;  %v35_v3 = vld [vmem:[%s1922_s0 + $0x30] sm:$0xff]  ;;  %v1468_v10 = vld [vmem:[%s1921_s2 + $0x188] sm:$0xff]   ;;  %v1472_v14 = vld [vmem:[%s1921_s2 + $0x198] sm:$0xff]  }
  0x18   :  { %1279 = vmatpush3.bf16.msra.mxu1 %v1425_v18  ;;  %v1167_v5 = vcombine.high %v31_v2, %v35_v3  ;;  %v1166_v8 = vcombine.low %v31_v2, %v35_v3  ;;  %v1469_v11 = vld [vmem:[%s1921_s2 + $0x1d0] sm:$0xff]   ;;  %v1473_v15 = vld [vmem:[%s1921_s2 + $0x1e0] sm:$0xff]   ;;  %v32_v16 = vld [vmem:[%s1922_s0 + $0x18] sm:$0xff] }
  0x19   :  { %1280 = vmatprep.subr.bf16.mxu1 %v1427_v19  ;;  %v1470_v12 = vld [vmem:[%s1921_s2 + $0x190] sm:$0xff]   ;;  %v36_v17 = vld [vmem:[%s1922_s0 + $0x38] sm:$0xff]  ;;  %v1474_v19 = vld [vmem:[%s1921_s2 + $0x1a0] sm:$0xff]  }
  0x1a   :  { %1378 = vmatpush3.bf16.msra.mxu0 %v1426_v20  ;;  %v1169_v18 = vcombine.high %v32_v16, %v36_v17  ;;  %v1475_v20 = vld [vmem:[%s1921_s2 + $0x1e8] sm:$0xff]   ;;  %v1479_v24 = vld [vmem:[%s1921_s2 + $0x1f8] sm:$0xff]  }
  0x1b   :  { %1379 = vmatprep.subr.bf16.mxu0 %v1513_v0  ;;  %v1480_v25 = vld [vmem:[%s1921_s2 + $0x1b8] sm:$0xff]   ;;  %v1481_v27 = vld [vmem:[%s1924_s5] ss:$12 sps:$4 sm:$0xff]  }
  0x1c   :  { %1281 = vmatpush3.bf16.msra.mxu1 %v1428_v21  ;;  %v1476_v21 = vld [vmem:[%s1921_s2 + $0x1a8] sm:$0xff]  }
  0x1d   :  { %1282 = vmatprep.subr.bf16.mxu1 %v1430_v23  ;;  %v1478_v23 = vld [vmem:[%s1921_s2 + $0x1b0] sm:$0xff]  }
  0x1e   :  { %1380 = vmatpush3.bf16.msra.mxu0 %v1429_v22  ;;  %v1477_v22 = vld [vmem:[%s1921_s2 + $0x1f0] sm:$0xff]  }
  0x1f   :  { %1290 = vmatprep.subr.bf16.mxu0 %v1433_v29  ;;  %v1484_v29 = vld [vmem:[%s1924_s5 + $0x8] ss:$12 sps:$4 sm:$0xff]  }
  0x20   :  { %1283 = vmatpush3.bf16.msra.mxu1 %v1431_v26  ;;  %v1168_v26 = vcombine.low %v32_v16, %v36_v17 }
  0x21   :  { %1382 = vmatmul.mubr.bf16.vlgmr.msra.gmra.mrb[0].mxu0 %v1432_v28  ;;  %1312 = vmatprep.subr.bf16.mxu1 %v1435_v31  ;;  %v1483_v28 = vld [vmem:[%s1924_s5 + $0x4] ss:$12 sps:$4 sm:$0xff]   ;;  %v1487_v31 = vld [vmem:[%s1924_s5 + $0x1c] ss:$12 sps:$4 sm:$0xff]  }
  0x22   :  { %1291 = vmatpush3.bf16.msra.mxu0 %v1434_v30  ;;  %775 = vmatprep.mubr.bf16.mxu0 %v1165_v63  ;;  %v1485_v30 = vld [vmem:[%s1924_s5 + $0x18] ss:$12 sps:$4 sm:$0xff]  }
  0x23   :  { %735 = vmatmul.mubr.bf16.vlgmr.msra.gmra.mrb[0].mxu1 %v1162_v33  ;;  %1292 = vmatprep.subr.bf16.mxu0 %v1437_v34  ;;  %v1491_v33 = vld [vmem:[%s1924_s5 + $0x34] ss:$12 sps:$4 sm:$0xff]   ;;  %v1489_v34 = vld [vmem:[%s1924_s5 + $0x30] ss:$12 sps:$4 sm:$0xff]  }
  0x24   :  { %1313 = vmatpush3.bf16.msra.mxu1 %v1436_v32  ;;  %816 = vmatprep.mubr.bf16.mxu1 %v1167_v5  ;;  %v1488_v32 = vld [vmem:[%s1924_s5 + $0x20] ss:$12 sps:$4 sm:$0xff]  }
  0x25   :  { %1314 = vmatprep.subr.bf16.mxu1 %v1439_v36  ;;  %v1495_v36 = vld [vmem:[%s1924_s5 + $0x4c] ss:$12 sps:$4 sm:$0xff]  }
  0x26   :  { %1293 = vmatpush3.bf16.msra.mxu0 %v1438_v35  ;;  %v1492_v35 = vld [vmem:[%s1924_s5 + $0x38] ss:$12 sps:$4 sm:$0xff]  }
  0x27   :  { %1294 = vmatprep.subr.bf16.mxu0 %v1441_v38  ;;  %v1496_v38 = vld [vmem:[%s1924_s5 + $0x50] ss:$12 sps:$4 sm:$0xff]  }
  0x28   :  { %1315 = vmatpush3.bf16.msra.mxu1 %v1440_v37  ;;  %v1493_v37 = vld [vmem:[%s1924_s5 + $0x48] ss:$12 sps:$4 sm:$0xff]  }
  0x29   :  { %1316 = vmatprep.subr.bf16.mxu1 %v1443_v40  ;;  %v1497_v40 = vld [vmem:[%s1924_s5 + $0x60] ss:$12 sps:$4 sm:$0xff]  }
  0x2a   :  { %1295 = vmatpush3.bf16.msra.mxu0 %v1442_v39  ;;  %v1499_v39 = vld [vmem:[%s1924_s5 + $0x64] ss:$12 sps:$4 sm:$0xff]  }
  0x2b   :  { %1296 = vmatprep.subr.bf16.mxu0 %v1445_v42  ;;  %v1503_v42 = vld [vmem:[%s1924_s5 + $0x7c] ss:$12 sps:$4 sm:$0xff]  }
  0x2c   :  { %1317 = vmatpush3.bf16.msra.mxu1 %v1444_v41  ;;  %v1500_v41 = vld [vmem:[%s1924_s5 + $0x68] ss:$12 sps:$4 sm:$0xff]  }
  0x2d   :  { %1318 = vmatprep.subr.bf16.mxu1 %v1447_v44  ;;  %v1504_v44 = vld [vmem:[%s1924_s5 + $0x80] ss:$12 sps:$4 sm:$0xff]  }
  0x2e   :  { %1297 = vmatpush3.bf16.msra.mxu0 %v1446_v43  ;;  %v1501_v43 = vld [vmem:[%s1924_s5 + $0x78] ss:$12 sps:$4 sm:$0xff]  }
  0x2f   :  { %1298 = vmatprep.subr.bf16.mxu0 %v1449_v46  ;;  %v1505_v46 = vld [vmem:[%s1924_s5 + $0x90] ss:$12 sps:$4 sm:$0xff]  }
  0x30   :  { %1319 = vmatpush3.bf16.msra.mxu1 %v1448_v45  ;;  %v1507_v45 = vld [vmem:[%s1924_s5 + $0x94] ss:$12 sps:$4 sm:$0xff]  }
  0x31   :  { %1320 = vmatprep.subr.bf16.mxu1 %v1451_v48  ;;  %v1511_v48 = vld [vmem:[%s1924_s5 + $0xac] ss:$12 sps:$4 sm:$0xff]  }
  0x32   :  { %1299 = vmatpush3.bf16.msra.mxu0 %v1450_v47  ;;  %v1508_v47 = vld [vmem:[%s1924_s5 + $0x98] ss:$12 sps:$4 sm:$0xff]  }
  0x33   :  { %1300 = vmatprep.subr.bf16.mxu0 %v1453_v50  ;;  %v1512_v50 = vld [vmem:[%s1924_s5 + $0xb0] ss:$12 sps:$4 sm:$0xff]  }
  0x34   :  { %1321 = vmatpush3.bf16.msra.mxu1 %v1452_v49  ;;  %v1509_v49 = vld [vmem:[%s1924_s5 + $0xa8] ss:$12 sps:$4 sm:$0xff]  }
  0x35   :  { %1322 = vmatprep.subr.bf16.mxu1 %v1455_v52 }
  0x36   :  { %1301 = vmatpush3.bf16.msra.mxu0 %v1454_v51  ;;  %v1515_v51 = vmov 0  }
  0x37   :  { %1302 = vmatprep.subr.bf16.mxu0 %v1457_v54 }
  0x38   :  { %1323 = vmatpush3.bf16.msra.mxu1 %v1456_v53 }
  0x39   :  { %1324 = vmatprep.subr.bf16.mxu1 %v1459_v56 }
  0x3a   :  { %1303 = vmatpush3.bf16.msra.mxu0 %v1458_v55 }
  0x3b   :  { %1304 = vmatprep.subr.bf16.mxu0 %v1461_v58 }
  0x3c   :  { %1325 = vmatpush3.bf16.msra.mxu1 %v1460_v57 }
  0x3d   :  { %1326 = vmatprep.subr.bf16.mxu1 %v1463_v59 }
  0x3e   :  { %1305 = vmatpush3.bf16.msra.mxu0 %v1462_v62 }
  0x3f   :  { %1334 = vmatprep.subr.bf16.mxu0 %v1465_v1 }
  0x40   :  { %1327 = vmatpush3.bf16.msra.mxu1 %v1464_v4 }
  0x41   :  { %776 = vmatmul.mubr.bf16.vlgmr.msra.gmra.mrb[4].mxu0 %v1164_v6  ;;  %1055 = vmatprep.subr.bf16.mxu1 %v1483_v28 }
  0x42   :  { %1335 = vmatpush3.bf16.msra.mxu0 %v1466_v7  ;;  %857 = vmatprep.mubr.bf16.mxu0 %v1169_v18 }
  0x43   :  { %817 = vmatmul.mubr.bf16.vlgmr.msra.gmra.mrb[4].mxu1 %v1166_v8  ;;  %1336 = vmatprep.subr.bf16.mxu0 %v1467_v9 }
  0x44   :  { %1056 = vmatpush1.bf16.msra.mxu1 %v1481_v27  ;;  %1087 = vmatprep.mubr.bf16.mxu1 %v1515_v51 }
  0x45   :  { %1057 = vmatprep.subr.bf16.mxu1 %v1487_v31 }
  0x46   :  { %1337 = vmatpush3.bf16.msra.mxu0 %v1468_v10 }
  0x47   :  { %1338 = vmatprep.subr.bf16.mxu0 %v1469_v11 }
  0x48   :  { %1058 = vmatpush1.bf16.msra.mxu1 %v1485_v30  ;;  %v912_v30 = vlaneseq }
  0x49   :  { %1059 = vmatprep.subr.bf16.mxu1 %v1491_v33 }
  0x4a   :  { %1339 = vmatpush3.bf16.msra.mxu0 %v1470_v12  ;;  %v913_v31 = vshrl.u32 %v912_v30, 7 }
  0x4b   :  { %1340 = vmatprep.subr.bf16.mxu0 %v1471_v13 }
  0x4c   :  { %1060 = vmatpush1.bf16.msra.mxu1 %v1489_v34  ;;  %v922_v33 = vsub.s32 2, %v913_v31  ;;  %v910_v34 = vld [vmem:[%s1926_s6] sm:$0x7] }
  0x4d   :  { %1061 = vmatprep.subr.bf16.mxu1 %v1495_v36 }
  0x4e   :  { %1341 = vmatpush3.bf16.msra.mxu0 %v1472_v14 }
  0x4f   :  { %1342 = vmatprep.subr.bf16.mxu0 %v1473_v15 }
  0x50   :  { %1062 = vmatpush1.bf16.msra.mxu1 %v1493_v37  ;;  %v923_v37 = vrot.slane %v910_v34, %v922_v33 }
  0x51   :  { %1063 = vmatprep.subr.bf16.mxu1 %v1499_v39 }
  0x52   :  { %1343 = vmatpush3.bf16.msra.mxu0 %v1474_v19 }
  0x53   :  { %1344 = vmatprep.subr.bf16.mxu0 %v1475_v20  ;;  %v1234_v20 = vld [vmem:[%s1925_s4] ss:$0 sm:$0xff] }
  0x54   :  { %1064 = vmatpush1.bf16.msra.mxu1 %v1497_v40 }
  0x55   :  { %1065 = vmatprep.subr.bf16.mxu1 %v1503_v42 }
  0x56   :  { %1345 = vmatpush3.bf16.msra.mxu0 %v1476_v21 }
  0x57   :  { %1346 = vmatprep.subr.bf16.mxu0 %v1477_v22 }
  0x58   :  { %1066 = vmatpush1.bf16.msra.mxu1 %v1501_v43 }
  0x59   :  { %1067 = vmatprep.subr.bf16.mxu1 %v1507_v45 }
  0x5a   :  { %1347 = vmatpush3.bf16.msra.mxu0 %v1478_v23 }
  0x5b   :  { %1348 = vmatprep.subr.bf16.mxu0 %v1479_v24 }
  0x5c   :  { %1068 = vmatpush1.bf16.msra.mxu1 %v1505_v46 }
  0x5d   :  { %1069 = vmatprep.subr.bf16.mxu1 %v1511_v48 }
  0x5e   :  { %1349 = vmatpush3.bf16.msra.mxu0 %v1480_v25 }
  0x5f   :  { %1385 = vmatprep.subr.bf16.mxu0 %v1513_v0 }
  0x60   :  { %1070 = vmatpush1.bf16.msra.mxu1 %v1509_v49 }
  0x61   :  { %858 = vmatmul.mubr.bf16.vlgmr.msra.gmra.mrb[8].mxu0 %v1168_v26 }
  0x62   :  { %1401 = vmatprep.mubr.msk.bf16.mxu0 %vm1514_vm0, %v1513_v0  ;;  %1386 = vmatpush3.bf16.msra.mxu0 %v1484_v29 }
  0x63   :  { %1387 = vmatprep.subr.bf16.mxu0 %v1513_v0 }
  0x66   :  { %1388 = vmatpush3.bf16.msra.mxu0 %v1488_v32  ;;  %v914_v32 = vsub.s32 0, %v913_v31 }
  0x67   :  { %1389 = vmatprep.subr.bf16.mxu0 %v1513_v0 }
  0x68   :  { %v915_v36 = vrot.slane %v910_v34, %v914_v32 }
  0x6a   :  { %1390 = vmatpush3.bf16.msra.mxu0 %v1492_v35  ;;  %v918_v35 = vsub.s32 1, %v913_v31 }
  0x6b   :  { %1391 = vmatprep.subr.bf16.mxu0 %v1513_v0 }
  0x6e   :  { %1392 = vmatpush3.bf16.msra.mxu0 %v1496_v38  ;;  %v919_v38 = vrot.slane %v910_v34, %v918_v35 }
  0x6f   :  { %1393 = vmatprep.subr.bf16.mxu0 %v1513_v0 }
  0x72   :  { %1394 = vmatpush3.bf16.msra.mxu0 %v1500_v41 }
  0x73   :  { %1395 = vmatprep.subr.bf16.mxu0 %v1513_v0 }
  0x76   :  { %1396 = vmatpush3.bf16.msra.mxu0 %v1504_v44 }
  0x77   :  { %1397 = vmatprep.subr.bf16.mxu0 %v1513_v0 }
  0x7a   :  { %1398 = vmatpush3.bf16.msra.mxu0 %v1508_v47 }
  0x7b   :  { %1399 = vmatprep.subr.bf16.mxu0 %v1513_v0 }
  0x7e   :  { %1400 = vmatpush3.bf16.msra.mxu0 %v1512_v50 }
  0xf4   :  { %v271_v52 = vpop.f32.mrb[0].mxu0 }
  0xf5   :  { %v1383_v53 = vpop.f32.mrb[1].mxu0 }
  0xf6   :  { %v1284_v54 = vpop.f32.mrb[0].mxu1  ;;  %v274_v55 = vpop.f32.mrb[2].mxu0 }
  0xf7   :  { %v1285_v56 = vpop.f32.mrb[1].mxu1  ;;  %v1384_v57 = vpop.f32.mrb[3].mxu0 }
  0xf8   :  { %v1286_v0 = vadd.f32 %v1285_v56, %v1284_v54  ;;  %v1287_v58 = vpop.f32.mrb[2].mxu1 }
  0xf9   :  { %v1288_v59 = vpop.f32.mrb[3].mxu1 }
  0xfa   :  { %v737_v60 = vadd.f32 %v1286_v0, %v271_v52  ;;  %v1289_v61 = vadd.f32 %v1288_v59, %v1287_v58 }
  0xfc   :  { %v740_v62 = vadd.f32 %v1289_v61, %v274_v55 }
 0x114   :  { %v1306_v63 = vpop.f32.mrb[4].mxu0 }
 0x115   :  { %v1307_v1 = vpop.f32.mrb[5].mxu0 }
 0x116   :  { %v1308_v2 = vadd.f32 %v1307_v1, %v1306_v63  ;;  %v1309_v3 = vpop.f32.mrb[6].mxu0  ;;  %v1328_v4 = vpop.f32.mrb[4].mxu1 }
 0x117   :  { %v1310_v5 = vpop.f32.mrb[7].mxu0  ;;  %v1329_v6 = vpop.f32.mrb[5].mxu1 }
 0x118   :  { %v778_v7 = vadd.f32 %v1308_v2, %v737_v60  ;;  %v1311_v8 = vadd.f32 %v1310_v5, %v1309_v3  ;;  %v1330_v9 = vadd.f32 %v1329_v6, %v1328_v4  ;;  %v1331_v10 = vpop.f32.mrb[6].mxu1 }
 0x119   :  { %v1332_v11 = vpop.f32.mrb[7].mxu1 }
 0x11a   :  { %v781_v12 = vadd.f32 %v1311_v8, %v740_v62  ;;  %v819_v13 = vadd.f32 %v1330_v9, %v778_v7  ;;  %v1333_v14 = vadd.f32 %v1332_v11, %v1331_v10 }
 0x11c   :  { %v822_v15 = vadd.f32 %v1333_v14, %v781_v12 }
 0x134   :  { %v1350_v16 = vpop.f32.mrb[8].mxu0 }
 0x135   :  { %v1351_v17 = vpop.f32.mrb[9].mxu0 }
 0x136   :  { %v1352_v18 = vadd.f32 %v1351_v17, %v1350_v16  ;;  %v1353_v19 = vpop.f32.mrb[10].mxu0 }
 0x137   :  { %v1354_v21 = vpop.f32.mrb[11].mxu0 }
 0x138   :  { %v860_v22 = vadd.f32 %v1352_v18, %v819_v13  ;;  %v1355_v23 = vadd.f32 %v1354_v21, %v1353_v19 }
 0x13a   :  { %v873_v24 = vadd.f32 %v1234_v20, %v860_v22  ;;  %v863_v25 = vadd.f32 %v1355_v23, %v822_v15 }
 0x13c   :  { %v874_v26 = vadd.f32 %v1234_v20, %v863_v25  ;;  %v875_v27 = vmax.f32 %v873_v24, 0.0 }
 0x13e   :  { %v876_v28 = vmax.f32 %v874_v26, 0.0 }
 0x140   :  { %v877_v29 = vpack.c.bf16 %v876_v28, %v875_v27 }
 0x142   :  { %1088 = vmatmul.mubr.bf16.vlgmr.msra.gmra.mrb[8].mxu1 %v877_v29  ;;  %1402 = vmatmul.mubr.bf16.vlgmr.msra.gmra.mrb[12].mxu0 %v877_v29 }
 0x215   :  { %v1089_v39 = vpop.f32.mrb[8].mxu1  ;;  %v1132_v40 = vpop.f32.mrb[12].mxu0 }
 0x216   :  { %v1090_v41 = vadd.f32 %v1089_v39, %v915_v36  ;;  %v1133_v42 = vadd.f32 %v1132_v40, %v923_v37  ;;  %v1091_v43 = vpop.f32.mrb[9].mxu1  ;;  %v1403_v44 = vpop.f32.mrb[13].mxu0 }
 0x217   :  { %v1092_v45 = vadd.f32 %v1091_v43, %v919_v38  ;;  %v1093_v46 = vpop.f32.mrb[10].mxu1  ;;  %v1135_v47 = vpop.f32.mrb[14].mxu0 }
 0x218   :  { %1139 = vst [vmem:[%s1927_s7] sm:$0xff] %v1090_v41  ;;  %1143 = vst [vmem:[%s1928_s8] sm:$0xff] %v1133_v42  ;;  %v1094_v48 = vadd.f32 %v1093_v46, %v915_v36  ;;  %v1136_v49 = vadd.f32 %v1135_v47, %v923_v37  ;;  %v1095_v50 = vpop.f32.mrb[11].mxu1  ;;  %v1404_v51 = vpop.f32.mrb[15].mxu0 }
 0x219   :  { %1140 = vst [vmem:[%s1927_s7 + $0x8] sm:$0xff] %v1092_v45  ;;  %v1096_v52 = vadd.f32 %v1095_v50, %v919_v38 }
 0x21a   :  { %1141 = vst [vmem:[%s1927_s7 + $0x10] sm:$0xff] %v1094_v48  ;;  %1144 = vst [vmem:[%s1928_s8 + $0x8] sm:$0xff] %v1136_v49 }
 0x21b   :  { %1142 = vst [vmem:[%s1927_s7 + $0x18] sm:$0xff] %v1096_v52 }

</bundles_post_ra>
